<compile_context>
chip_gen: v5e
topology: v5e:2x2
jax: 0.10.0
libtpu: 0.0.40
codegen_flags: <defaults>
</compile_context>

<pallas_src>
import functools
import math

import jax
import jax.numpy as jnp
from jax.experimental import pallas as pl
from jax.experimental.pallas import tpu as pltpu


def _sdp_kernel(q_ref, k_ref, v_ref, o_ref, acc_ref, *, mm_dtype):
    """One (batch-block, q-tile, k-tile) grid step.

    q_ref  : (BB, H, TQ, D)
    k_ref  : (BB, H, TK, D)   untransposed; QK^T is a trans-B contraction
    v_ref  : (BB, H, TK, D)
    o_ref  : (BB, H, TQ, D)
    acc_ref: (BB, H, TQ, D) f32 scratch, resident across the key axis.
    """
    ki = pl.program_id(2)

    @pl.when(ki == 0)
    def _init():
        acc_ref[...] = jnp.zeros_like(acc_ref)

    BB, H, TQ, D = q_ref.shape
    TK = k_ref.shape[2]
    G = BB * H  # merged (batch-block, head) axis -> batched matmul for MXU

    # Scale q (H*TQ*D elements) instead of scores (H*TQ*TK elements).
    scale = 1.0 / math.sqrt(float(D))
    q = (q_ref[...].astype(jnp.float32) * scale).astype(mm_dtype).reshape(G, TQ, D)
    k = k_ref[...].astype(mm_dtype).reshape(G, TK, D)
    v = v_ref[...].astype(mm_dtype).reshape(G, TK, D)

    # scores[g, i, j] = <q[g, i, :], k[g, j, :]> / sqrt(d_k)
    # Contraction on the last dim of both operands (trans-B) -> no transpose.
    scores = jnp.einsum(
        "gqd,gkd->gqk", q, k, preferred_element_type=jnp.float32
    ).reshape(BB, H, TQ, TK)

    # PyTorch F.softmax with implicit dim on a 4-D tensor -> dim=1 (heads).
    # All H heads are resident in the block, so this is exact per k-tile; the
    # key axis only ever accumulates (no online-softmax carry needed).
    m = jnp.max(scores, axis=1, keepdims=True)
    e = jnp.exp(scores - m)  # keep f32 (v5e EUP has no bf16)
    denom = jnp.sum(e, axis=1, keepdims=True)
    attn = e * pl.reciprocal(denom, approx=False)  # 1/H fewer ops than divide

    out = jnp.einsum(
        "gqk,gkd->gqd",
        attn.astype(mm_dtype).reshape(G, TQ, TK),
        v,
        preferred_element_type=jnp.float32,
    )
    acc_ref[...] += out.reshape(BB, H, TQ, D)

    @pl.when(ki == pl.num_programs(2) - 1)
    def _writeback():
        # TODO(synk): for D < 128 the output stores are masked (vst.msk);
        # peak store bandwidth needs D >= 128 or a lane-dense folded layout.
        o_ref[...] = acc_ref[...].astype(o_ref.dtype)


def _vmem_capacity_bytes():
    try:
        return int(pltpu.get_tpu_info().vmem_capacity_bytes)
    except Exception:  # unknown chip / query unavailable: assume v7x-class
        return 64 * 2**20


def _vmem_bytes(bb, h, tq, tk, d):
    """Conservative VMEM estimate for one grid step (bytes)."""
    f32, bf16 = 4, 2
    # Double-buffered pipeline tiles: q, k, v, out.
    io = 2 * bb * h * (tq * d + tk * d + tk * d + tq * d) * f32
    # Persistent f32 accumulator.
    acc = bb * h * tq * d * f32
    # Softmax transients: ~5 (BB,H,TQ,TK) f32 slabs (scores, scores-m, exp,
    # attn, PV result) plus m / denom at (BB,1,TQ,TK).
    transients = (5 * h + 2) * bb * tq * tk * f32
    # bf16 matmul-input copies (q, k, v, attn).
    lowp = bb * h * (tq * d + 2 * tk * d + tq * tk) * bf16
    return io + acc + transients + lowp


def _choose_tiling(B, H, S, D, budget):
    # Tiny problems: fold the whole batch into one grid step (per-step
    # pipeline overhead would otherwise dominate).
    if _vmem_bytes(B, H, S, S, D) <= 4 * 2**20:
        return B, S, S
    if S % 128 == 0:
        # Prefer tall tiles (large TQ): K/V are re-read from HBM S/TQ times,
        # independent of TK, so TQ is the bandwidth lever; TK only trades
        # VMEM footprint.
        candidates = (
            (1024, 512), (1024, 256), (1024, 128),
            (512, 512), (512, 256), (512, 128),
            (256, 256), (256, 128), (128, 128),
        )
        for tq, tk in candidates:
            if S % tq == 0 and S % tk == 0 and _vmem_bytes(1, H, tq, tk, D) <= budget:
                return 1, tq, tk
        # Never fall back to whole-sequence tiles: smallest legal tile.
        return 1, 128, 128
    # TODO(synk): S not a multiple of 128 would need zero-padded K/V key
    # tiles (safe here because the softmax is per-(q,k) over heads and padded
    # V rows contribute zero); not implemented, so fall back to full-S tiles.
    return 1, S, S


def _kv_block_spec(shape, index_map, buffer_count):
    """K/V spec with optional deeper pipelining; falls back cleanly."""
    if buffer_count and hasattr(pl, "Buffered"):
        try:
            return pl.BlockSpec(shape, index_map,
                                pipeline_mode=pl.Buffered(buffer_count))
        except TypeError:
            pass
    return pl.BlockSpec(shape, index_map)


def scale_dot_product(q, k, v, mask=None, *, use_bf16_matmul=True):
    # `mask` intentionally unused: the reference module assigns the
    # masked_fill result to a typo'd variable and never applies it.
    del mask
    B, H, S, D = q.shape

    capacity = _vmem_capacity_bytes()
    is_small_vmem = capacity <= 96 * 2**20  # v7x-class (64 MiB / TensorCore)
    budget = min(44 * 2**20, (capacity * 3) // 8)  # ~24 MiB v7x, ~44 MiB v5e/v6e

    BB, TQ, TK = _choose_tiling(B, H, S, D, budget)

    # v7x shards the "parallel" grid axes across 2 TensorCores: when tiling,
    # make sure the parallel extent is >= 2 so both cores get work.
    if is_small_vmem and BB == 1:
        while (B // BB) * (S // TQ) < 2 and TQ >= 256 and S % (TQ // 2) == 0:
            TQ //= 2

    grid = (B // BB, S // TQ, S // TK)
    multi_k = grid[2] > 1

    est = _vmem_bytes(BB, H, TQ, TK, D)
    extra_kv_buf = 2 * BB * H * TK * D * 4  # one more k + v buffer each
    kv_buffers = 3 if (multi_k and est + extra_kv_buf <= budget) else 0
    if kv_buffers:
        est += extra_kv_buf

    # q/out index_maps ignore the key index -> q tile and accumulator stay
    # resident across the innermost (arbitrary) key axis.
    q_spec = pl.BlockSpec((BB, H, TQ, D), lambda b, qi, ki: (b, 0, qi, 0))
    k_spec = _kv_block_spec((BB, H, TK, D), lambda b, qi, ki: (b, 0, ki, 0),
                            kv_buffers)
    v_spec = _kv_block_spec((BB, H, TK, D), lambda b, qi, ki: (b, 0, ki, 0),
                            kv_buffers)
    o_spec = pl.BlockSpec((BB, H, TQ, D), lambda b, qi, ki: (b, 0, qi, 0))

    cap_limit = min(96 * 2**20, (capacity * 3) // 4)
    vmem_limit = int(min(cap_limit, max(32 * 2**20, 2 * est)))
    vmem_limit = max(vmem_limit, int(1.25 * est))  # never clamp below estimate

    mm_dtype = jnp.bfloat16 if use_bf16_matmul else jnp.float32
    kernel = functools.partial(_sdp_kernel, mm_dtype=mm_dtype)

    return pl.pallas_call(
        kernel,
        out_shape=jax.ShapeDtypeStruct((B, H, S, D), q.dtype),
        grid_spec=pltpu.PrefetchScalarGridSpec(
            num_scalar_prefetch=0,
            grid=grid,
            in_specs=[q_spec, k_spec, v_spec],
            out_specs=o_spec,
            scratch_shapes=[pltpu.VMEM((BB, H, TQ, D), jnp.float32)],
        ),
        compiler_params=pltpu.CompilerParams(
            dimension_semantics=("parallel", "parallel", "arbitrary"),
            vmem_limit_bytes=vmem_limit,
        ),
    )(q, k, v)


def _reference(q, k, v):
    # Pure-JAX mirror of the (buggy-but-faithful) PyTorch forward.
    d_k = float(k.shape[-1])
    scores = jnp.einsum("bhqd,bhkd->bhqk", q, k) / jnp.sqrt(d_k)
    attn = jax.nn.softmax(scores, axis=1)  # implicit dim -> heads axis
    return jnp.einsum("bhqk,bhkd->bhqd", attn, v)


if __name__ == "__main__":
    base_key = jax.random.PRNGKey(0)

    def run_case(B, H, S, D, atol, rtol, fro_tol=None):
        kq, kk, kv = jax.random.split(jax.random.fold_in(base_key, S), 3)
        q = jax.random.normal(kq, (B, H, S, D), dtype=jnp.float32)
        k = jax.random.normal(kk, (B, H, S, D), dtype=jnp.float32)
        v = jax.random.normal(kv, (B, H, S, D), dtype=jnp.float32)
        mask = jnp.ones((B, H, S, S), dtype=jnp.int32)  # ignored (module bug)

        out = jax.block_until_ready(scale_dot_product(q, k, v, mask))
        ref = _reference(q, k, v)
        assert out.shape == (B, H, S, D)
        # Elementwise bound sized for bf16 MXU inputs with f32 accumulation.
        err = jnp.abs(out - ref)
        assert bool(jnp.all(err <= atol + rtol * jnp.abs(ref))), float(jnp.max(err))
        if fro_tol is not None:
            # Tight aggregate check (robust to rare elementwise tails).
            fro = float(jnp.linalg.norm(out - ref) / jnp.linalg.norm(ref))
            assert fro < fro_tol, fro

    # Small shape matching the module's expected usage: single-step path.
    run_case(B=2, H=4, S=8, D=32, atol=3e-2, rtol=3e-2)
    # Moderate shape: exercises the tiled (batch, q-tile, k-tile) path with
    # key-axis accumulation and multi-buffered K/V tiles.
    run_case(B=1, H=4, S=1024, D=128, atol=3e-1, rtol=3e-2, fro_tol=1e-2)

    print("KERNEL_OK")
</pallas_src>

<mosaic_0001>
module attributes {stable_mosaic.version = 11 : i64} {
  func.func @_sdp_kernel(%arg0: i32, %arg1: i32, %arg2: i32, %arg3: memref<2x4x8x32xf32, #tpu.memory_space<vmem>>, %arg4: memref<2x4x8x32xf32, #tpu.memory_space<vmem>>, %arg5: memref<2x4x8x32xf32, #tpu.memory_space<vmem>>, %arg6: memref<2x4x8x32xf32, #tpu.memory_space<vmem>>, %arg7: memref<2x4x8x32xf32, #tpu.memory_space<vmem>>) attributes {dimension_semantics = [#tpu.dimension_semantics<parallel>, #tpu.dimension_semantics<parallel>, #tpu.dimension_semantics<arbitrary>], iteration_bounds = array<i64: 1, 1, 1>, scalar_prefetch = 0 : i64, scratch_operands = 1 : i64, tpu.core_type = #tpu.core_type<tc>, window_params = [{transform_indices = @transform_0, window_bounds = array<i64: 2, 4, 8, 32>}, {transform_indices = @transform_1, window_bounds = array<i64: 2, 4, 8, 32>}, {transform_indices = @transform_2, window_bounds = array<i64: 2, 4, 8, 32>}, {transform_indices = @transform_3, window_bounds = array<i64: 2, 4, 8, 32>}]} {
    %c0_i32 = arith.constant 0 : i32
    %0 = arith.cmpi eq, %arg2, %c0_i32 : i32
    %1 = arith.extui %0 : i1 to i32
    %c0_i32_0 = arith.constant 0 : i32
    %2 = arith.cmpi ne, %1, %c0_i32_0 : i32
    scf.if %2 {
      %cst_26 = arith.constant 0.000000e+00 : f32
      %36 = vector.broadcast %cst_26 : f32 to vector<2x4x8x32xf32>
      %c0_27 = arith.constant 0 : index
      %c0_28 = arith.constant 0 : index
      %c0_29 = arith.constant 0 : index
      %c0_30 = arith.constant 0 : index
      %37 = vector.load %arg7[%c0_27, %c0_28, %c0_29, %c0_30] : memref<2x4x8x32xf32, #tpu.memory_space<vmem>>, vector<2x4x8x32xf32>
      tpu.vector_store %arg7[%c0_27, %c0_28, %c0_29, %c0_30], %36 {strides = array<i32>} : memref<2x4x8x32xf32, #tpu.memory_space<vmem>>, vector<2x4x8x32xf32>,
    } else {
    }
    %c0 = arith.constant 0 : index
    %c0_1 = arith.constant 0 : index
    %c0_2 = arith.constant 0 : index
    %c0_3 = arith.constant 0 : index
    %3 = vector.load %arg3[%c0, %c0_1, %c0_2, %c0_3] : memref<2x4x8x32xf32, #tpu.memory_space<vmem>>, vector<2x4x8x32xf32>
    %cst = arith.constant 0.176776692 : f32
    %4 = vector.broadcast %cst : f32 to vector<2x4x8x32xf32>
    %5 = arith.mulf %3, %4 : vector<2x4x8x32xf32>
    %6 = arith.truncf %5 : vector<2x4x8x32xf32> to vector<2x4x8x32xbf16>
    %7 = vector.shape_cast %6 : vector<2x4x8x32xbf16> to vector<8x8x32xbf16>
    %c0_4 = arith.constant 0 : index
    %c0_5 = arith.constant 0 : index
    %c0_6 = arith.constant 0 : index
    %c0_7 = arith.constant 0 : index
    %8 = vector.load %arg4[%c0_4, %c0_5, %c0_6, %c0_7] : memref<2x4x8x32xf32, #tpu.memory_space<vmem>>, vector<2x4x8x32xf32>
    %9 = arith.truncf %8 : vector<2x4x8x32xf32> to vector<2x4x8x32xbf16>
    %10 = vector.shape_cast %9 : vector<2x4x8x32xbf16> to vector<8x8x32xbf16>
    %c0_8 = arith.constant 0 : index
    %c0_9 = arith.constant 0 : index
    %c0_10 = arith.constant 0 : index
    %c0_11 = arith.constant 0 : index
    %11 = vector.load %arg5[%c0_8, %c0_9, %c0_10, %c0_11] : memref<2x4x8x32xf32, #tpu.memory_space<vmem>>, vector<2x4x8x32xf32>
    %12 = arith.truncf %11 : vector<2x4x8x32xf32> to vector<2x4x8x32xbf16>
    %13 = vector.shape_cast %12 : vector<2x4x8x32xbf16> to vector<8x8x32xbf16>
    "tpu.trace_start"() <{level = 10 : i32, message = "gqd,gkd->gqk"}> : () -> ()
    %cst_12 = arith.constant dense<0.000000e+00> : vector<8x8x8xf32>
    %14 = tpu.matmul %7, %10, %cst_12 {dimension_numbers = #tpu.dot_dimension_numbers<[2], [2], [1], [1], [0, 0, 0, 1, 1, 1], [0], [0]>} : vector<8x8x32xbf16>, vector<8x8x32xbf16>, vector<8x8x8xf32> -> vector<8x8x8xf32>
    "tpu.trace_stop"() : () -> ()
    %15 = vector.shape_cast %14 : vector<8x8x8xf32> to vector<2x4x8x8xf32>
    %cst_13 = arith.constant dense<0xFF800000> : vector<2x8x8xf32>
    %16 = vector.multi_reduction <maximumf>, %15, %cst_13 [1] : vector<2x4x8x8xf32> to vector<2x8x8xf32>
    %17 = vector.shape_cast %16 : vector<2x8x8xf32> to vector<2x1x8x8xf32>
    %18 = vector.broadcast %17 : vector<2x1x8x8xf32> to vector<2x4x8x8xf32>
    %19 = arith.subf %15, %18 : vector<2x4x8x8xf32>
    %20 = math.exp %19 : vector<2x4x8x8xf32>
    %cst_14 = arith.constant dense<0.000000e+00> : vector<2x8x8xf32>
    %21 = vector.multi_reduction <add>, %20, %cst_14 [1] : vector<2x4x8x8xf32> to vector<2x8x8xf32>
    %22 = vector.shape_cast %21 : vector<2x8x8xf32> to vector<2x1x8x8xf32>
    %23 = tpu.reciprocal %22 : vector<2x1x8x8xf32> -> vector<2x1x8x8xf32>
    %24 = vector.broadcast %23 : vector<2x1x8x8xf32> to vector<2x4x8x8xf32>
    %25 = arith.mulf %20, %24 : vector<2x4x8x8xf32>
    %26 = arith.truncf %25 : vector<2x4x8x8xf32> to vector<2x4x8x8xbf16>
    %27 = vector.shape_cast %26 : vector<2x4x8x8xbf16> to vector<8x8x8xbf16>
    "tpu.trace_start"() <{level = 10 : i32, message = "gqk,gkd->gqd"}> : () -> ()
    %cst_15 = arith.constant dense<0.000000e+00> : vector<8x8x32xf32>
    %28 = tpu.matmul %27, %13, %cst_15 {dimension_numbers = #tpu.dot_dimension_numbers<[2], [1], [1], [2], [0, 0, 0, 1, 1, 2], [0], [0]>} : vector<8x8x8xbf16>, vector<8x8x32xbf16>, vector<8x8x32xf32> -> vector<8x8x32xf32>
    "tpu.trace_stop"() : () -> ()
    %c0_16 = arith.constant 0 : index
    %c0_17 = arith.constant 0 : index
    %c0_18 = arith.constant 0 : index
    %c0_19 = arith.constant 0 : index
    %29 = vector.load %arg7[%c0_16, %c0_17, %c0_18, %c0_19] : memref<2x4x8x32xf32, #tpu.memory_space<vmem>>, vector<2x4x8x32xf32>
    %30 = vector.shape_cast %28 : vector<8x8x32xf32> to vector<2x4x8x32xf32>
    %31 = arith.addf %29, %30 : vector<2x4x8x32xf32>
    %c0_20 = arith.constant 0 : index
    %c0_21 = arith.constant 0 : index
    %c0_22 = arith.constant 0 : index
    %c0_23 = arith.constant 0 : index
    %32 = vector.load %arg7[%c0_20, %c0_21, %c0_22, %c0_23] : memref<2x4x8x32xf32, #tpu.memory_space<vmem>>, vector<2x4x8x32xf32>
    tpu.vector_store %arg7[%c0_20, %c0_21, %c0_22, %c0_23], %31 {strides = array<i32>} : memref<2x4x8x32xf32, #tpu.memory_space<vmem>>, vector<2x4x8x32xf32>,
    %c0_i32_24 = arith.constant 0 : i32
    %33 = arith.cmpi eq, %arg2, %c0_i32_24 : i32
    %34 = arith.extui %33 : i1 to i32
    %c0_i32_25 = arith.constant 0 : i32
    %35 = arith.cmpi ne, %34, %c0_i32_25 : i32
    scf.if %35 {
      %c0_26 = arith.constant 0 : index
      %c0_27 = arith.constant 0 : index
      %c0_28 = arith.constant 0 : index
      %c0_29 = arith.constant 0 : index
      %36 = vector.load %arg7[%c0_26, %c0_27, %c0_28, %c0_29] : memref<2x4x8x32xf32, #tpu.memory_space<vmem>>, vector<2x4x8x32xf32>
      %c0_30 = arith.constant 0 : index
      %c0_31 = arith.constant 0 : index
      %c0_32 = arith.constant 0 : index
      %c0_33 = arith.constant 0 : index
      %37 = vector.load %arg6[%c0_30, %c0_31, %c0_32, %c0_33] : memref<2x4x8x32xf32, #tpu.memory_space<vmem>>, vector<2x4x8x32xf32>
      tpu.vector_store %arg6[%c0_30, %c0_31, %c0_32, %c0_33], %36 {strides = array<i32>} : memref<2x4x8x32xf32, #tpu.memory_space<vmem>>, vector<2x4x8x32xf32>,
    } else {
    }
    return
  }
  func.func @transform_0(%arg0: i32, %arg1: i32, %arg2: i32) -> (i32, i32, i32, i32) {
    %c0_i32 = arith.constant 0 : i32
    %c0_i32_0 = arith.constant 0 : i32
    %c0_i32_1 = arith.constant 0 : i32
    return %arg0, %c0_i32, %arg1, %c0_i32_0 : i32, i32, i32, i32
  }
  func.func @transform_1(%arg0: i32, %arg1: i32, %arg2: i32) -> (i32, i32, i32, i32) {
    %c0_i32 = arith.constant 0 : i32
    %c0_i32_0 = arith.constant 0 : i32
    %c0_i32_1 = arith.constant 0 : i32
    return %arg0, %c0_i32, %arg2, %c0_i32_0 : i32, i32, i32, i32
  }
  func.func @transform_2(%arg0: i32, %arg1: i32, %arg2: i32) -> (i32, i32, i32, i32) {
    %c0_i32 = arith.constant 0 : i32
    %c0_i32_0 = arith.constant 0 : i32
    %c0_i32_1 = arith.constant 0 : i32
    return %arg0, %c0_i32, %arg2, %c0_i32_0 : i32, i32, i32, i32
  }
  func.func @transform_3(%arg0: i32, %arg1: i32, %arg2: i32) -> (i32, i32, i32, i32) {
    %c0_i32 = arith.constant 0 : i32
    %c0_i32_0 = arith.constant 0 : i32
    %c0_i32_1 = arith.constant 0 : i32
    return %arg0, %c0_i32, %arg1, %c0_i32_0 : i32, i32, i32, i32
  }
}

</mosaic_0001>

<bundles_post_ra>
// kernel: tpu_custom_call.1
= control target key start
LH: loop header
LB: loop body
LE: loop exit
PB: predicated region body
PF: predicated region fallthrough
CT: control target
= control target key end

     0   :  { %8 = vsyncpa [#allocation4], 0  ;;  %s882_s0 = inlined_call_operand.hbm [shape: f32[2,4,8,32], index: 0, kind: input, shape index: {}]   ;;  %s883_s1 = inlined_call_operand.hbm [shape: f32[2,4,8,32], index: 1, kind: input, shape index: {}]   ;;  %s884_s2 = inlined_call_operand.hbm [shape: f32[2,4,8,32], index: 2, kind: input, shape index: {}]   ;;  %s885_s3 = inlined_call_operand.hbm [shape: f32[2,4,8,32], index: 3, kind: output, shape index: {}]  }
   0x1   :  { %9 = vsyncpa [#allocation7], 0 }
   0x2   :  { %10 = vsyncpa [#allocation5], 0  ;;  %s28_s14 = sshll.u32 %s883_s1, 4  ;;  %s743_s15 = smov [#allocation6]   ;;  %s29_s14 = int_to_ptr.hbm [resolvable:$true] %s28_s14 }
   0x3   :  { %s30_s16 = sshll.u32 %s743_s15, 4  ;;  %s15_s19 = sshll.u32 %s882_s0, 4  ;;  %s31_s16 = int_to_ptr.vmem [resolvable:$true] %s30_s16  ;;  %s16_s19 = int_to_ptr.hbm [resolvable:$true] %s15_s19 }
   0x4   :  { %s744_s20 = smov 128   ;;  %s745_s21 = smov 8  }
   0x5   :  { %36 = dma.hbm_to_vmem [thread:$0]  %s29_s14, 1024, %s31_s16, [#allocation7], %s744_s20, %s744_s20, %s745_s21  }
   0x6   :  { %s746_s22 = smov [#allocation3]   ;;  %s41_s1 = sshll.u32 %s884_s2, 4  ;;  %s42_s1 = int_to_ptr.hbm [resolvable:$true] %s41_s1 }
   0x7   :  { %s17_s23 = sshll.u32 %s746_s22, 4  ;;  %s747_s0 = smov [#allocation8]   ;;  %s18_s23 = int_to_ptr.vmem [resolvable:$true] %s17_s23 }
   0x8   :  { %23 = dma.hbm_to_vmem [thread:$0]  %s16_s19, 1024, %s18_s23, [#allocation4], %s744_s20, %s744_s20, %s745_s21  }
   0x9   :  { %s43_s26 = sshll.u32 %s747_s0, 4  ;;  %s44_s26 = int_to_ptr.vmem [resolvable:$true] %s43_s26 }
   0xa   :  { %49 = dma.hbm_to_vmem [thread:$0]  %s42_s1, 1024, %s44_s26, [#allocation7], %s744_s20, %s744_s20, %s745_s21  }
   0xb   :  { %737 = dma.done.wait [#allocation4], 1024  }
   0xc   :  { %738 = vsyncadd [#allocation4], 4294966272 }
   0xd   :  { %739 = dma.done.wait [#allocation7], 2048  }
   0xe   :  { %740 = vsyncadd [#allocation7], 4294965248  ;;  %vm67_vm0 = vcmask 261120   ;;  %v100_v0 = vld [vmem:[#allocation6] sm:$0xff]  ;;  %v101_v1 = vld [vmem:[#allocation6 + $0x8] sm:$0xff]  ;;  %vm285_vm1 = vcmask 64512  }
   0xf   :  { %v102_v2 = vld [vmem:[#allocation6 + $0x10] sm:$0xff]  ;;  %v108_v3 = vpack.c.bf16 %v100_v0, %v100_v0  ;;  %v109_v4 = vpack.c.bf16 %v101_v1, %v101_v1  ;;  %v103_v6 = vld [vmem:[#allocation6 + $0x18] sm:$0xff]  ;;  %v76_v7 = vld [vmem:[#allocation3] sm:$0xff]  ;;  %vm385_vm2 = vcmask 1043456   ;;  %s749_s2 = smov [#allocation9]   ;;  %s584_s30 = sshll.u32 %s885_s3, 4  ;;  %s585_s30 = int_to_ptr.hbm [resolvable:$true] %s584_s30 }
  0x10   :  { %v110_v5 = vpack.c.bf16 %v102_v2, %v102_v2  ;;  %v77_v8 = vld [vmem:[#allocation3 + $0x8] sm:$0xff]  ;;  %v111_v9 = vpack.c.bf16 %v103_v6, %v103_v6  ;;  %v84_v10 = vmul.f32 0.17677669, %v76_v7  ;;  %v78_v12 = vld [vmem:[#allocation3 + $0x10] sm:$0xff]  ;;  %v79_v13 = vld [vmem:[#allocation3 + $0x18] sm:$0xff]  ;;  %s582_s27 = sshll.u32 %s749_s2, 4  ;;  %s583_s27 = int_to_ptr.vmem [resolvable:$true] %s582_s27 }
  0x11   :  { %v85_v11 = vmul.f32 0.17677669, %v77_v8  ;;  %v137_v14 = vsel %vm67_vm0, %v108_v3, 0  ;;  %v156_v15 = vsel %vm67_vm0, %v109_v4, 0  ;;  %v86_v17 = vmul.f32 0.17677669, %v78_v12 }
  0x12   :  { %v175_v16 = vsel %vm67_vm0, %v110_v5, 0  ;;  %v106_v18 = vld [vmem:[#allocation6 + $0x30] sm:$0xff]  ;;  %146 = vmatpush.bf16.xpose.msra.mxu0 %v137_v14  ;;  %165 = vmatpush.bf16.xpose.msra.mxu1 %v156_v15  ;;  %v194_v19 = vsel %vm67_vm0, %v111_v9, 0  ;;  %v87_v20 = vmul.f32 0.17677669, %v79_v13  ;;  %v107_v21 = vld [vmem:[#allocation6 + $0x38] sm:$0xff]  ;;  %v92_v28 = vpack.c.bf16 %v84_v10, %v84_v10 }
  0x13   :  { %v104_v22 = vld [vmem:[#allocation6 + $0x20] sm:$0xff]  ;;  %v105_v23 = vld [vmem:[#allocation6 + $0x28] sm:$0xff]  ;;  %184 = vmatpush.bf16.xpose.msra.mxu2 %v175_v16  ;;  %203 = vmatpush.bf16.xpose.msra.mxu3 %v194_v19  ;;  %v114_v24 = vpack.c.bf16 %v106_v18, %v106_v18  ;;  %v115_v25 = vpack.c.bf16 %v107_v21, %v107_v21  ;;  %v93_v29 = vpack.c.bf16 %v85_v11, %v85_v11  ;;  %v82_v38 = vld [vmem:[#allocation3 + $0x30] sm:$0xff] }
  0x14   :  { %v112_v26 = vpack.c.bf16 %v104_v22, %v104_v22  ;;  %v113_v27 = vpack.c.bf16 %v105_v23, %v105_v23  ;;  %v94_v32 = vpack.c.bf16 %v86_v17, %v86_v17  ;;  %v95_v33 = vpack.c.bf16 %v87_v20, %v87_v20  ;;  %v80_v36 = vld [vmem:[#allocation3 + $0x20] sm:$0xff]  ;;  %v81_v37 = vld [vmem:[#allocation3 + $0x28] sm:$0xff]  ;;  %v83_v39 = vld [vmem:[#allocation3 + $0x38] sm:$0xff] }
  0x15   :  { %v251_v30 = vsel %vm67_vm0, %v114_v24, 0  ;;  %v270_v31 = vsel %vm67_vm0, %v115_v25, 0  ;;  %v88_v40 = vmul.f32 0.17677669, %v80_v36  ;;  %v89_v41 = vmul.f32 0.17677669, %v81_v37 }
  0x16   :  { %v213_v34 = vsel %vm67_vm0, %v112_v26, 0  ;;  %v232_v35 = vsel %vm67_vm0, %v113_v27, 0  ;;  %v90_v42 = vmul.f32 0.17677669, %v82_v38  ;;  %v91_v43 = vmul.f32 0.17677669, %v83_v39 }
  0x17   :  { %v96_v44 = vpack.c.bf16 %v88_v40, %v88_v40  ;;  %v97_v45 = vpack.c.bf16 %v89_v41, %v89_v41  ;;  %v118_v9 = vld [vmem:[#allocation8 + $0x10] sm:$0xff]  ;;  %v119_v10 = vld [vmem:[#allocation8 + $0x18] sm:$0xff]  ;;  %v116_v11 = vld [vmem:[#allocation8] sm:$0xff] }
  0x18   :  { %v98_v46 = vpack.c.bf16 %v90_v42, %v90_v42  ;;  %v99_v47 = vpack.c.bf16 %v91_v43, %v91_v43  ;;  %v126_v12 = vpack.c.bf16 %v118_v9, %v118_v9  ;;  %v117_v13 = vld [vmem:[#allocation8 + $0x8] sm:$0xff]  ;;  %v127_v14 = vpack.c.bf16 %v119_v10, %v119_v10 }
  0x19   :  { %598 = vmatmul.msk.bf16.vlgmr.msra.gmra.mxu0 %vm67_vm0, %v92_v28  ;;  %599 = vmatmul.msk.bf16.vlgmr.msra.gmra.mxu1 %vm67_vm0, %v93_v29  ;;  %v124_v15 = vpack.c.bf16 %v116_v11, %v116_v11  ;;  %v125_v17 = vpack.c.bf16 %v117_v13, %v117_v13 }
  0x1a   :  { %222 = vmatpush.bf16.xpose.msrb.mxu0 %v213_v34  ;;  %241 = vmatpush.bf16.xpose.msrb.mxu1 %v232_v35  ;;  %v425_v16 = vsel %vm385_vm2, %v126_v12, 0  ;;  %v444_v18 = vsel %vm385_vm2, %v127_v14, 0 }
  0x1b   :  { %260 = vmatpush.bf16.xpose.msrb.mxu2 %v251_v30  ;;  %279 = vmatpush.bf16.xpose.msrb.mxu3 %v270_v31  ;;  %v387_v19 = vsel %vm385_vm2, %v124_v15, 0  ;;  %v406_v20 = vsel %vm385_vm2, %v125_v17, 0 }
  0x1c   :  { %600 = vmatmul.msk.bf16.vlgmr.msra.gmra.mxu2 %vm67_vm0, %v94_v32  ;;  %601 = vmatmul.msk.bf16.vlgmr.msra.gmra.mxu3 %vm67_vm0, %v95_v33 }
  0x22   :  { %396 = vmatpush.bf16.msra.mxu0 %v387_v19  ;;  %415 = vmatpush.bf16.msra.mxu1 %v406_v20 }
  0x23   :  { %434 = vmatpush.bf16.msra.mxu2 %v425_v16  ;;  %453 = vmatpush.bf16.msra.mxu3 %v444_v18 }
  0x29   :  { %602 = vmatmul.msk.bf16.vlgmr.msrb.gmra.mxu0 %vm67_vm0, %v96_v44  ;;  %603 = vmatmul.msk.bf16.vlgmr.msrb.gmra.mxu1 %vm67_vm0, %v97_v45 }
  0x2c   :  { %604 = vmatmul.msk.bf16.vlgmr.msrb.gmra.mxu2 %vm67_vm0, %v98_v46  ;;  %605 = vmatmul.msk.bf16.vlgmr.msrb.gmra.mxu3 %vm67_vm0, %v99_v47 }
  0x96   :  { %v148_v48 = vpop.f32.mrf.mxu0  ;;  %v167_v49 = vpop.f32.mrf.mxu1 }
  0x97   :  { %v286_v50 = vsel %vm285_vm1, %v148_v48, -inf  ;;  %v287_v51 = vsel %vm285_vm1, %v167_v49, -inf }
  0x9e   :  { %v150_v56 = vpop.f32.mrf.mxu0  ;;  %v169_v57 = vpop.f32.mrf.mxu1 }
  0x9f   :  { %v186_v52 = vpop.f32.mrf.mxu2  ;;  %v205_v53 = vpop.f32.mrf.mxu3 }
  0xa0   :  { %v288_v54 = vsel %vm285_vm1, %v186_v52, -inf  ;;  %v290_v55 = vsel %vm285_vm1, %v205_v53, -inf }
  0xa1   :  { %v289_v58 = vmax.f32 %v286_v50, %v288_v54  ;;  %v291_v59 = vmax.f32 %v287_v51, %v290_v55  ;;  %v120_v54 = vld [vmem:[#allocation8 + $0x20] sm:$0xff] }
  0xa3   :  { %v292_v60 = vmax.f32 %v289_v58, %v291_v59  ;;  %v121_v58 = vld [vmem:[#allocation8 + $0x28] sm:$0xff]  ;;  %v128_v59 = vpack.c.bf16 %v120_v54, %v120_v54 }
  0xa5   :  { %v300_v61 = vsub.f32 %v148_v48, %v292_v60  ;;  %v301_v62 = vsub.f32 %v167_v49, %v292_v60  ;;  %v302_v63 = vsub.f32 %v186_v52, %v292_v60  ;;  %v303_v0 = vsub.f32 %v205_v53, %v292_v60  ;;  %v122_v52 = vld [vmem:[#allocation8 + $0x30] sm:$0xff]  ;;  %v123_v53 = vld [vmem:[#allocation8 + $0x38] sm:$0xff] }
  0xa6   :  { %v224_v7 = vpop.f32.mrf.mxu0  ;;  %v243_v8 = vpop.f32.mrf.mxu1  ;;  %v130_v56 = vpack.c.bf16 %v122_v52, %v122_v52  ;;  %v131_v57 = vpack.c.bf16 %v123_v53, %v123_v53 }
  0xa7   :  { %v308_v1 = vmul.f32 1.442695, %v300_v61  ;;  %v310_v2 = vmul.f32 1.442695, %v301_v62  ;;  %v312_v3 = vmul.f32 1.442695, %v302_v63  ;;  %v188_v4 = vpop.f32.mrf.mxu2  ;;  %v207_v5 = vpop.f32.mrf.mxu3  ;;  %v129_v62 = vpack.c.bf16 %v121_v58, %v121_v58 }
  0xa8   :  { %v314_v6 = vmul.f32 1.442695, %v303_v0  ;;  %v293_v21 = vsel %vm285_vm1, %v224_v7, -inf  ;;  %v294_v22 = vsel %vm285_vm1, %v243_v8, -inf  ;;  %v501_v60 = vsel %vm385_vm2, %v130_v56, 0 }
  0xa9   :  { %621 = vpow2.f32 %v308_v1  ;;  %v520_v61 = vsel %vm385_vm2, %v131_v57, 0  ;;  %510 = vmatpush.bf16.msrb.mxu2 %v501_v60  ;;  %v463_v63 = vsel %vm385_vm2, %v128_v59, 0  ;;  %v482_v0 = vsel %vm385_vm2, %v129_v62, 0 }
  0xaa   :  { %623 = vpow2.f32 %v310_v2  ;;  %529 = vmatpush.bf16.msrb.mxu3 %v520_v61  ;;  %472 = vmatpush.bf16.msrb.mxu0 %v463_v63  ;;  %v748_v4 = vmov 0.0  }
  0xab   :  { %625 = vpow2.f32 %v312_v3  ;;  %491 = vmatpush.bf16.msrb.mxu1 %v482_v0  ;;  %68 = vst.msk [vmem:[#allocation2] sm:$0xff] %vm67_vm0, %v748_v4 }
  0xac   :  { %627 = vpow2.f32 %v314_v6  ;;  %69 = vst.msk [vmem:[#allocation2 + $0x8] sm:$0xff] %vm67_vm0, %v748_v4 }
  0xad   :  { %70 = vst.msk [vmem:[#allocation2 + $0x10] sm:$0xff] %vm67_vm0, %v748_v4 }
  0xae   :  { %v226_v30 = vpop.f32.mrf.mxu0  ;;  %v245_v31 = vpop.f32.mrf.mxu1  ;;  %71 = vst.msk [vmem:[#allocation2 + $0x18] sm:$0xff] %vm67_vm0, %v748_v4 }
  0xaf   :  { %v814_v23 = vpop.eup %621  ;;  %v262_v24 = vpop.f32.mrf.mxu2  ;;  %72 = vst.msk [vmem:[#allocation2 + $0x20] sm:$0xff] %vm67_vm0, %v748_v4 }
  0xb0   :  { %v281_v25 = vpop.f32.mrf.mxu3  ;;  %v816_v26 = vpop.eup %623  ;;  %v324_v27 = vsel %vm285_vm1, %v814_v23, 0.0  ;;  %v295_v28 = vsel %vm285_vm1, %v262_v24, -inf  ;;  %73 = vst.msk [vmem:[#allocation2 + $0x28] sm:$0xff] %vm67_vm0, %v748_v4 }
  0xb1   :  { %v297_v29 = vsel %vm285_vm1, %v281_v25, -inf  ;;  %v822_v32 = vpop.eup %625  ;;  %v325_v33 = vsel %vm285_vm1, %v816_v26, 0.0  ;;  %v296_v34 = vmax.f32 %v293_v21, %v295_v28  ;;  %74 = vst.msk [vmem:[#allocation2 + $0x30] sm:$0xff] %vm67_vm0, %v748_v4 }
  0xb2   :  { %v298_v35 = vmax.f32 %v294_v22, %v297_v29  ;;  %v826_v36 = vpop.eup %627  ;;  %v326_v37 = vadd.f32 %v325_v33, %v324_v27  ;;  %v327_v38 = vsel %vm285_vm1, %v822_v32, 0.0  ;;  %75 = vst.msk [vmem:[#allocation2 + $0x38] sm:$0xff] %vm67_vm0, %v748_v4 }
  0xb3   :  { %v329_v41 = vsel %vm285_vm1, %v826_v36, 0.0 }
  0xb4   :  { %v299_v39 = vmax.f32 %v296_v34, %v298_v35  ;;  %v328_v40 = vadd.f32 %v327_v38, %v326_v37 }
  0xb5   :  { %v538_v56 = vld [vmem:[#allocation2 + $0x18] sm:$0xff] }
  0xb6   :  { %v304_v42 = vsub.f32 %v224_v7, %v299_v39  ;;  %v305_v43 = vsub.f32 %v243_v8, %v299_v39  ;;  %v306_v44 = vsub.f32 %v262_v24, %v299_v39  ;;  %v307_v45 = vsub.f32 %v281_v25, %v299_v39 }
  0xb7   :  { %v330_v46 = vadd.f32 %v329_v41, %v328_v40  ;;  %v264_v50 = vpop.f32.mrf.mxu2 }
  0xb8   :  { %v316_v47 = vmul.f32 1.442695, %v304_v42  ;;  %v318_v48 = vmul.f32 1.442695, %v305_v43  ;;  %v320_v49 = vmul.f32 1.442695, %v306_v44  ;;  %v283_v51 = vpop.f32.mrf.mxu3 }
  0xb9   :  { %629 = vrcp.f32 %v330_v46  ;;  %v322_v55 = vmul.f32 1.442695, %v307_v45  ;;  %v349_v11 = vand.u32 2147483648, %v330_v46  ;;  %v347_v14 = vand.u32 2147483647, %v330_v46  ;;  %v536_v50 = vld [vmem:[#allocation2 + $0x8] sm:$0xff] }
  0xba   :  { %631 = vpow2.f32 %v316_v47  ;;  %vm343_vm4 = vweird.f32 %v330_v46 }
  0xbb   :  { %633 = vpow2.f32 %v318_v48  ;;  %v350_v19 = vor.u32 1.1754944e-38, %v349_v11  ;;  %vm348_vm6 = vcmp.eq.f32.partialorder %v347_v14, 8.507059e+37  ;;  %v541_v11 = vld [vmem:[#allocation2 + $0x30] sm:$0xff] }
  0xbc   :  { %635 = vpow2.f32 %v320_v49  ;;  %v535_v49 = vld [vmem:[#allocation2] sm:$0xff] }
  0xbd   :  { %637 = vpow2.f32 %v322_v55  ;;  %v537_v55 = vld [vmem:[#allocation2 + $0x10] sm:$0xff] }
  0xbf   :  { %v630_v1 = vpop.eup %629 }
  0xc0   :  { %v632_v2 = vpop.eup %631  ;;  %v339_v3 = vmul.f32 %v630_v1, %v330_v46  ;;  %vm344_vm3 = vweird.f32 %v630_v1 }
  0xc1   :  { %v634_v5 = vpop.eup %633  ;;  %v331_v6 = vsel %vm285_vm1, %v632_v2, 0.0  ;;  %vm345_vm5 = vmor %vm343_vm4, %vm344_vm3 }
  0xc2   :  { %v636_v7 = vpop.eup %635  ;;  %v340_v8 = vsub.f32 1.0, %v339_v3  ;;  %v332_v9 = vsel %vm285_vm1, %v634_v5, 0.0 }
  0xc3   :  { %v638_v10 = vpop.eup %637  ;;  %v333_v12 = vadd.f32 %v332_v9, %v331_v6  ;;  %v334_v15 = vsel %vm285_vm1, %v636_v7, 0.0 }
  0xc4   :  { %v341_v13 = vmul.f32 %v630_v1, %v340_v8  ;;  %v336_v18 = vsel %vm285_vm1, %v638_v10, 0.0 }
  0xc5   :  { %v335_v16 = vadd.f32 %v334_v15, %v333_v12  ;;  %v542_v12 = vld [vmem:[#allocation2 + $0x38] sm:$0xff] }
  0xc6   :  { %v342_v17 = vadd.f32 %v630_v1, %v341_v13 }
  0xc7   :  { %v337_v20 = vadd.f32 %v336_v18, %v335_v16 }
  0xc8   :  { %v346_v21 = vsel %vm345_vm5, %v630_v1, %v342_v17  ;;  %v539_v1 = vld [vmem:[#allocation2 + $0x20] sm:$0xff] }
  0xc9   :  { %v351_v22 = vsel %vm348_vm6, %v350_v19, %v346_v21  ;;  %639 = vrcp.f32 %v337_v20  ;;  %vm357_vm8 = vweird.f32 %v337_v20 }
  0xca   :  { %v369_v24 = vmul.f32 %v826_v36, %v351_v22  ;;  %v366_v25 = vmul.f32 %v814_v23, %v351_v22  ;;  %v367_v27 = vmul.f32 %v816_v26, %v351_v22  ;;  %v368_v28 = vmul.f32 %v822_v32, %v351_v22 }
  0xcb   :  { %v363_v23 = vand.u32 2147483648, %v337_v20  ;;  %v361_v26 = vand.u32 2147483647, %v337_v20 }
  0xcc   :  { %v377_v29 = vpack.c.bf16 %v369_v24, %v369_v24  ;;  %v374_v30 = vpack.c.bf16 %v366_v25, %v366_v25  ;;  %v375_v31 = vpack.c.bf16 %v367_v27, %v367_v27  ;;  %v376_v33 = vpack.c.bf16 %v368_v28, %v368_v28 }
  0xcd   :  { %v364_v38 = vor.u32 1.1754944e-38, %v363_v23  ;;  %vm362_vm10 = vcmp.eq.f32.partialorder %v361_v26, 8.507059e+37 }
  0xce   :  { %606 = vmatmul.msk.bf16.vlgmr.msra.gmra.mxu0 %vm285_vm1, %v374_v30  ;;  %607 = vmatmul.msk.bf16.vlgmr.msra.gmra.mxu1 %vm285_vm1, %v375_v31 }
  0xcf   :  { %v640_v34 = vpop.eup %639  ;;  %608 = vmatmul.msk.bf16.vlgmr.msra.gmra.mxu2 %vm285_vm1, %v376_v33  ;;  %609 = vmatmul.msk.bf16.vlgmr.msra.gmra.mxu3 %vm285_vm1, %v377_v29 }
  0xd0   :  { %v353_v35 = vmul.f32 %v640_v34, %v337_v20  ;;  %vm358_vm7 = vweird.f32 %v640_v34 }
  0xd1   :  { %vm359_vm9 = vmor %vm357_vm8, %vm358_vm7 }
  0xd2   :  { %v354_v36 = vsub.f32 1.0, %v353_v35 }
  0xd4   :  { %v355_v37 = vmul.f32 %v640_v34, %v354_v36 }
  0xd6   :  { %v356_v32 = vadd.f32 %v640_v34, %v355_v37 }
  0xd8   :  { %v360_v39 = vsel %vm359_vm9, %v640_v34, %v356_v32 }
  0xd9   :  { %v365_v40 = vsel %vm362_vm10, %v364_v38, %v360_v39 }
  0xda   :  { %v373_v41 = vmul.f32 %v638_v10, %v365_v40  ;;  %v370_v42 = vmul.f32 %v632_v2, %v365_v40  ;;  %v371_v43 = vmul.f32 %v634_v5, %v365_v40  ;;  %v372_v44 = vmul.f32 %v636_v7, %v365_v40  ;;  %v540_v2 = vld [vmem:[#allocation2 + $0x28] sm:$0xff] }
  0xdc   :  { %v381_v45 = vpack.c.bf16 %v373_v41, %v373_v41  ;;  %v378_v46 = vpack.c.bf16 %v370_v42, %v370_v42  ;;  %v379_v47 = vpack.c.bf16 %v371_v43, %v371_v43  ;;  %v380_v48 = vpack.c.bf16 %v372_v44, %v372_v44 }
  0xde   :  { %610 = vmatmul.msk.bf16.vlgmr.msrb.gmra.mxu0 %vm285_vm1, %v378_v46  ;;  %611 = vmatmul.msk.bf16.vlgmr.msrb.gmra.mxu1 %vm285_vm1, %v379_v47 }
  0xdf   :  { %612 = vmatmul.msk.bf16.vlgmr.msrb.gmra.mxu2 %vm285_vm1, %v380_v48  ;;  %613 = vmatmul.msk.bf16.vlgmr.msrb.gmra.mxu3 %vm285_vm1, %v381_v45 }
 0x14b   :  { %v398_v51 = vpop.f32.mrf.mxu0  ;;  %v417_v52 = vpop.f32.mrf.mxu1 }
 0x14c   :  { %v543_v53 = vadd.f32 %v535_v49, %v398_v51  ;;  %v544_v54 = vadd.f32 %v536_v50, %v417_v52 }
 0x14e   :  { %551 = vst.msk [vmem:[#allocation2] sm:$0xff] %vm67_vm0, %v543_v53 }
 0x14f   :  { %552 = vst.msk [vmem:[#allocation2 + $0x8] sm:$0xff] %vm67_vm0, %v544_v54 }
 0x152   :  { %v436_v57 = vpop.f32.mrf.mxu2  ;;  %v455_v58 = vpop.f32.mrf.mxu3 }
 0x153   :  { %v545_v59 = vadd.f32 %v537_v55, %v436_v57  ;;  %v546_v60 = vadd.f32 %v538_v56, %v455_v58  ;;  %v400_v61 = vpop.f32.mrf.mxu0  ;;  %v419_v62 = vpop.f32.mrf.mxu1 }
 0x155   :  { %553 = vst.msk [vmem:[#allocation2 + $0x10] sm:$0xff] %vm67_vm0, %v545_v59  ;;  %v562_v63 = vld [vmem:[#allocation2] sm:$0xff] }
 0x156   :  { %554 = vst.msk [vmem:[#allocation2 + $0x18] sm:$0xff] %vm67_vm0, %v546_v60  ;;  %v563_v0 = vld [vmem:[#allocation2 + $0x8] sm:$0xff] }
 0x157   :  { %570 = vst.msk [vmem:[#allocation9] sm:$0xff] %vm67_vm0, %v562_v63 }
 0x158   :  { %571 = vst.msk [vmem:[#allocation9 + $0x8] sm:$0xff] %vm67_vm0, %v563_v0 }
 0x15a   :  { %v438_v3 = vpop.f32.mrf.mxu2  ;;  %v457_v4 = vpop.f32.mrf.mxu3 }
 0x15b   :  { %v474_v5 = vpop.f32.mrf.mxu0  ;;  %v493_v6 = vpop.f32.mrf.mxu1 }
 0x15c   :  { %v547_v7 = vadd.f32 %v539_v1, %v474_v5  ;;  %v548_v8 = vadd.f32 %v540_v2, %v493_v6  ;;  %v564_v9 = vld [vmem:[#allocation2 + $0x10] sm:$0xff] }
 0x15d   :  { %v565_v10 = vld [vmem:[#allocation2 + $0x18] sm:$0xff]  ;;  %572 = vst.msk [vmem:[#allocation9 + $0x10] sm:$0xff] %vm67_vm0, %v564_v9 }
 0x15e   :  { %555 = vst.msk [vmem:[#allocation2 + $0x20] sm:$0xff] %vm67_vm0, %v547_v7 }
 0x15f   :  { %556 = vst.msk [vmem:[#allocation2 + $0x28] sm:$0xff] %vm67_vm0, %v548_v8 }
 0x160   :  { %573 = vst.msk [vmem:[#allocation9 + $0x18] sm:$0xff] %vm67_vm0, %v565_v10 }
 0x162   :  { %v512_v13 = vpop.f32.mrf.mxu2  ;;  %v531_v14 = vpop.f32.mrf.mxu3 }
 0x163   :  { %v549_v15 = vadd.f32 %v541_v11, %v512_v13  ;;  %v550_v16 = vadd.f32 %v542_v12, %v531_v14  ;;  %v476_v17 = vpop.f32.mrf.mxu0  ;;  %v495_v18 = vpop.f32.mrf.mxu1 }
 0x165   :  { %557 = vst.msk [vmem:[#allocation2 + $0x30] sm:$0xff] %vm67_vm0, %v549_v15  ;;  %v566_v19 = vld [vmem:[#allocation2 + $0x20] sm:$0xff] }
 0x166   :  { %558 = vst.msk [vmem:[#allocation2 + $0x38] sm:$0xff] %vm67_vm0, %v550_v16  ;;  %v567_v20 = vld [vmem:[#allocation2 + $0x28] sm:$0xff] }
 0x167   :  { %574 = vst.msk [vmem:[#allocation9 + $0x20] sm:$0xff] %vm67_vm0, %v566_v19 }
 0x168   :  { %575 = vst.msk [vmem:[#allocation9 + $0x28] sm:$0xff] %vm67_vm0, %v567_v20 }
 0x16a   :  { %v514_v21 = vpop.f32.mrf.mxu2  ;;  %v533_v22 = vpop.f32.mrf.mxu3 }
 0x16c   :  { %v568_v24 = vld [vmem:[#allocation2 + $0x30] sm:$0xff] }
 0x16d   :  { %v569_v25 = vld [vmem:[#allocation2 + $0x38] sm:$0xff]  ;;  %576 = vst.msk [vmem:[#allocation9 + $0x30] sm:$0xff] %vm67_vm0, %v568_v24 }
 0x16e   :  { %577 = vst.msk [vmem:[#allocation9 + $0x38] sm:$0xff] %vm67_vm0, %v569_v25 }
 0x16f   :  { %590 = dma.vmem_to_hbm [thread:$0]  %s583_s27, 1024, %s585_s30, [#allocation5], %s744_s20, %s744_s20, %s745_s21  }
 0x170   :  { %741 = dma.done.wait [#allocation5], 1024  }
 0x171   :  { %742 = vsyncadd [#allocation5], 4294966272 }
 0x172   :  { %595 = vsyncpa [#allocation4], 1 }
 0x173   :  { %596 = vsyncpa [#allocation7], 1 }
 0x174   :  { %597 = vsyncpa [#allocation5], 1 }

</bundles_post_ra>
